<compile_context>
chip_gen: v7x
topology: tpu7x:2x2x1
jax: 0.10.0
libtpu: 0.0.40
codegen_flags: <defaults>
</compile_context>

<pallas_src>
import functools

import jax
import jax.numpy as jnp
from jax.experimental import pallas as pl
from jax.experimental.pallas import tpu as pltpu


def _round_up(a, b):
    return -(-a // b) * b


def _chip_config():
    """Returns (has_int_mxu, vmem_cap_bytes, prefer_tn128)."""
    try:
        kind = jax.devices()[0].device_kind.lower()
    except Exception:
        kind = ""
    is_v5 = "v5" in kind
    is_v6 = "v6" in kind
    has_int_mxu = is_v5 or is_v6          # native int8 MXU with exact int32 accumulation
    if has_int_mxu:
        vmem_cap = 100 * 1024 * 1024      # 128 MiB physical VMEM on v5e/v5p/v6e
    else:
        vmem_cap = 48 * 1024 * 1024       # v7x: 64 MiB physical -> leave headroom
    return has_int_mxu, vmem_cap, is_v5   # v5e MXU is 4x128^2 -> prefer TN=128


def _pick_tm(m):
    """Largest M tile (multiple of 128) that minimizes padding of M."""
    best, best_pad = 128, None
    for t in (128, 256, 384, 512, 640, 768, 896, 1024):
        pad = _round_up(m, t) - m
        if best_pad is None or pad < best_pad or (pad == best_pad and t > best):
            best, best_pad = t, pad
    return best


def _qconv_kernel_single(lhs_ref, rhs_ref, b_ref, s_ref, o_ref, *,
                         out_zp, qmin, qmax, dot_dtype, operand_cast):
    """Single K step: dot + requantize, written straight to the output tile."""
    lhs = lhs_ref[...]
    rhs = rhs_ref[...]
    if operand_cast is not None:          # bf16 MXU path: operands streamed as int8
        lhs = lhs.astype(operand_cast)
        rhs = rhs.astype(operand_cast)
    acc = jnp.dot(lhs, rhs, preferred_element_type=dot_dtype)
    out = (acc.astype(jnp.float32) + b_ref[...]) * s_ref[...] + float(out_zp)
    o_ref[...] = jnp.clip(jnp.round(out), float(qmin), float(qmax)).astype(jnp.int8)


def _qconv_kernel_ktiled(lhs_ref, rhs_ref, b_ref, s_ref, o_ref, acc_ref, *,
                         out_zp, qmin, qmax, dot_dtype, operand_cast):
    """K-tiled reduction with an exact int32 accumulator scratch."""
    k = pl.program_id(2)
    lhs = lhs_ref[...]
    rhs = rhs_ref[...]
    if operand_cast is not None:
        lhs = lhs.astype(operand_cast)
        rhs = rhs.astype(operand_cast)
    # Per-tile dot is exact (TK <= 1024 on the f32 path); casting to int32 keeps the
    # full-K accumulation bit-exact even for very deep channel counts.
    prod = jnp.dot(lhs, rhs, preferred_element_type=dot_dtype).astype(jnp.int32)

    @pl.when(k == 0)
    def _assign():                        # direct assign: no zero-init store pass
        acc_ref[...] = prod

    @pl.when(k > 0)
    def _accumulate():
        acc_ref[...] += prod

    @pl.when(k == pl.num_programs(2) - 1)
    def _finalize():
        out = (acc_ref[...].astype(jnp.float32) + b_ref[...]) * s_ref[...] + float(out_zp)
        o_ref[...] = jnp.clip(jnp.round(out), float(qmin), float(qmax)).astype(jnp.int8)


def quantized_conv2d_pallas(
    x,                     # int8 [N, C, H, W]
    weight,                # int8 [OC, IC, KH, KW]
    bias,                  # int32 [OC]
    input_zero_point,      # python int
    output_zero_point,     # python int
    input_scale,           # python float
    weight_scale,          # float32 [OC, 1, 1, 1]
    output_scale,          # python float
    stride,                # int or (sh, sw)
    padding,               # int, (pad_h, pad_w), or torch F.pad 4-tuple (l, r, t, b)
    dilation=1,            # int or (dh, dw)
    groups=1,
    bitwidth_x=8,
    bitwidth_w=8,
):
    if isinstance(stride, int):
        stride = (stride, stride)
    if isinstance(dilation, int):
        dilation = (dilation, dilation)
    if isinstance(padding, int):
        padding = (padding, padding)
    if len(padding) == 2:                  # (pad_h, pad_w), symmetric
        ph_t = ph_b = int(padding[0])
        pw_l = pw_r = int(padding[1])
    else:                                  # torch F.pad order: (w_left, w_right, h_top, h_bot)
        pw_l, pw_r, ph_t, ph_b = (int(p) for p in padding)
    sh, sw = int(stride[0]), int(stride[1])
    dh, dw = int(dilation[0]), int(dilation[1])
    assert groups == 1  # TODO(synk): grouped / depthwise conv not implemented in the Pallas path

    N, C, H, W = x.shape
    OC, IC, KH, KW = weight.shape

    # ---- XLA glue: pad with the input zero point, im2col ---------------------------
    # TODO(synk): fuse im2col into the kernel (per-tap shifted row-band matmuls against
    # an NHWC-padded activation kept in HBM) to remove the KH*KW-fold HBM expansion.
    x_pad = jnp.pad(x, ((0, 0), (0, 0), (ph_t, ph_b), (pw_l, pw_r)),
                    constant_values=jnp.int8(input_zero_point))
    Hp, Wp = H + ph_t + ph_b, W + pw_l + pw_r
    OH = (Hp - (dh * (KH - 1) + 1)) // sh + 1
    OW = (Wp - (dw * (KW - 1) + 1)) // sw + 1

    taps = []
    for kh in range(KH):
        for kw in range(KW):
            taps.append(x_pad[:, :,
                              kh * dh: kh * dh + (OH - 1) * sh + 1: sh,
                              kw * dw: kw * dw + (OW - 1) * sw + 1: sw])
    patches5 = jnp.stack(taps, axis=2)        # [N, C, T, OH, OW], T = KH*KW
    T = KH * KW
    M = N * OH * OW
    Kd = C * T

    has_int_mxu, vmem_cap, prefer_tn128 = _chip_config()
    operand_cast = None if has_int_mxu else jnp.bfloat16
    dot_dtype = jnp.int32 if has_int_mxu else jnp.float32

    # Small OC: transpose the matmul so M (large) is the output lane dimension instead
    # of padding OC 8 -> 128 (wasted MXU columns / HBM writes / epilogue VPU work).
    transpose_out = OC <= 32

    # ---- K (reduction) tiling ----
    # bf16/f32 MXU path is only exact for a single dot up to K = 1024 at worst-case int8.
    single_k_max = 2048 if has_int_mxu else 1024
    if Kd <= single_k_max:
        TK, Kp = Kd, Kd
    else:
        TK = 1024
        Kp = _round_up(Kd, TK)                # zero padding contributes 0
    k_tiles = Kp // TK

    # ---- OC padding / OC tile ----
    if transpose_out:
        OCp = _round_up(OC, 8)                # sublane dim of output: no lane-pad waste
        TN = OCp
    else:
        OCp = _round_up(OC, 128)              # lane-dense output
        if OCp <= 512 and Kp * OCp <= (6 << 20):
            TN = OCp                          # weight slab VMEM-resident; j axis collapses
        elif prefer_tn128:
            TN = 128                          # v5e: match its 4x128^2 MXU
        else:
            TN = 256 if OCp % 256 == 0 else 128
    oc_tiles = OCp // TN

    # ---- M tiling: minimize padding; split only if there'd be a single parallel tile ----
    TM = _pick_tm(M)
    Mp = _round_up(M, TM)
    if (Mp // TM) * oc_tiles == 1 and M >= 256 and M % 256 == 0:
        TM = M // 2                           # two tiles so both v7x TensorCores get work
        Mp = M
    m_tiles = Mp // TM

    # ---- build operands in the chosen orientation (int8 streamed; cast in-kernel) ----
    scale_vals = (float(input_scale)
                  * weight_scale.reshape(OC).astype(jnp.float32)
                  / float(output_scale))
    if transpose_out:
        rhs = patches5.transpose(1, 2, 0, 3, 4).reshape(Kd, M)      # patches^T [K, M]
        lhs = weight.reshape(OC, Kd)                                # weight   [OC, K]
        if OCp != OC:
            lhs = jnp.pad(lhs, ((0, OCp - OC), (0, 0)))
        if Kp != Kd:
            lhs = jnp.pad(lhs, ((0, 0), (0, Kp - Kd)))
            rhs = jnp.pad(rhs, ((0, Kp - Kd), (0, 0)))
        if Mp != M:
            rhs = jnp.pad(rhs, ((0, 0), (0, Mp - M)))
        b_arr = jnp.zeros((OCp, 1), jnp.float32).at[:OC, 0].set(bias.astype(jnp.float32))
        s_arr = jnp.zeros((OCp, 1), jnp.float32).at[:OC, 0].set(scale_vals)
        lhs_block, rhs_block, out_block = (OCp, TK), (TK, TM), (OCp, TM)
        lhs_spec = pl.BlockSpec(lhs_block, lambda i, j, k: (0, k))
        rhs_spec = pl.BlockSpec(rhs_block, lambda i, j, k: (k, i))
        b_spec = pl.BlockSpec((OCp, 1), lambda i, j, k: (0, 0))
        s_spec = pl.BlockSpec((OCp, 1), lambda i, j, k: (0, 0))
        out_spec = pl.BlockSpec(out_block, lambda i, j, k: (0, i))
        out_shape = (OCp, Mp)
    else:
        lhs = patches5.transpose(0, 3, 4, 1, 2).reshape(M, Kd)      # patches [M, K]
        rhs = weight.reshape(OC, Kd).T                              # weight  [K, OC]
        if OCp != OC:
            rhs = jnp.pad(rhs, ((0, 0), (0, OCp - OC)))
        if Kp != Kd:
            lhs = jnp.pad(lhs, ((0, 0), (0, Kp - Kd)))
            rhs = jnp.pad(rhs, ((0, Kp - Kd), (0, 0)))
        if Mp != M:
            lhs = jnp.pad(lhs, ((0, Mp - M), (0, 0)))
        b_arr = jnp.zeros((1, OCp), jnp.float32).at[0, :OC].set(bias.astype(jnp.float32))
        s_arr = jnp.zeros((1, OCp), jnp.float32).at[0, :OC].set(scale_vals)
        lhs_block, rhs_block, out_block = (TM, TK), (TK, TN), (TM, TN)
        lhs_spec = pl.BlockSpec(lhs_block, lambda i, j, k: (i, k))
        rhs_spec = pl.BlockSpec(rhs_block, lambda i, j, k: (k, j))
        b_spec = pl.BlockSpec((1, TN), lambda i, j, k: (0, j))
        s_spec = pl.BlockSpec((1, TN), lambda i, j, k: (0, j))
        out_spec = pl.BlockSpec(out_block, lambda i, j, k: (i, j))
        out_shape = (Mp, OCp)

    grid = (m_tiles, oc_tiles, k_tiles)

    # NOTE: output clamp derived from bitwidth_x, matching the reference signature usage.
    qmin = -(1 << (bitwidth_x - 1))
    qmax = (1 << (bitwidth_x - 1)) - 1
    common = dict(out_zp=int(output_zero_point), qmin=qmin, qmax=qmax,
                  dot_dtype=dot_dtype, operand_cast=operand_cast)
    if k_tiles == 1:
        kernel = functools.partial(_qconv_kernel_single, **common)
        scratch_shapes = ()
    else:
        kernel = functools.partial(_qconv_kernel_ktiled, **common)
        scratch_shapes = (pltpu.VMEM(out_block, jnp.int32),)

    # ---- VMEM budget (per-chip cap; headroom below physical VMEM) ----
    cast_bytes = 0 if has_int_mxu else 2
    lhs_e = lhs_block[0] * lhs_block[1]
    rhs_e = rhs_block[0] * rhs_block[1]
    out_e = out_block[0] * out_block[1]
    est = (2 * (lhs_e + rhs_e + out_e)            # double-buffered int8 tiles
           + (lhs_e + rhs_e) * cast_bytes         # in-kernel bf16 operand copies
           + (out_e * 4 if k_tiles > 1 else 0)    # int32 accumulator scratch
           + out_e * 8                            # f32 temporaries in the epilogue
           + 8 * max(out_block[0], out_block[1]) * 4)
    vmem_limit = int(min(vmem_cap, max(32 * 1024 * 1024, 2 * est)))

    out = pl.pallas_call(
        kernel,
        out_shape=jax.ShapeDtypeStruct(out_shape, jnp.int8),
        grid=grid,
        in_specs=[lhs_spec, rhs_spec, b_spec, s_spec],
        out_specs=out_spec,
        scratch_shapes=scratch_shapes,
        compiler_params=pltpu.CompilerParams(
            dimension_semantics=("parallel", "parallel", "arbitrary"),
            vmem_limit_bytes=vmem_limit,
        ),
    )(lhs, rhs, b_arr, s_arr)

    # NCHW to match the torch module.  (Drop this transpose if the consumer takes NHWC.)
    if transpose_out:
        out = out[:OC, :M].reshape(OC, N, OH, OW).transpose(1, 0, 2, 3)
    else:
        out = out[:M, :OC].reshape(N, OH, OW, OC).transpose(0, 3, 1, 2)
    return out


def _reference(x, weight, bias, in_zp, out_zp, in_s, w_s, out_s,
               stride, padding, dilation):
    # pure-JAX mirror of the torch reference (float conv is exact at these magnitudes)
    x_pad = jnp.pad(
        x, ((0, 0), (0, 0), (padding[0], padding[0]), (padding[1], padding[1])),
        constant_values=jnp.int8(in_zp),
    )
    acc = jax.lax.conv_general_dilated(
        x_pad.astype(jnp.float32), weight.astype(jnp.float32),
        window_strides=stride, padding="VALID", rhs_dilation=dilation,
        dimension_numbers=("NCHW", "OIHW", "NCHW"),
    )
    acc = jnp.round(acc) + bias.reshape(1, -1, 1, 1).astype(jnp.float32)
    out = acc * (float(in_s) * w_s.reshape(1, -1, 1, 1).astype(jnp.float32) / float(out_s))
    out = out + float(out_zp)
    return jnp.clip(jnp.round(out), -128, 127).astype(jnp.int8)


if __name__ == "__main__":
    def run_case(key, N, C, H, W, OC, KH, KW, stride, padding, dilation,
                 in_zp, out_zp, in_s, out_s):
        k_x, k_w, k_b, k_ws = jax.random.split(key, 4)
        x = jax.random.randint(k_x, (N, C, H, W), -100, 100, dtype=jnp.int32).astype(jnp.int8)
        weight = jax.random.randint(k_w, (OC, C, KH, KW), -100, 100,
                                    dtype=jnp.int32).astype(jnp.int8)
        bias = jax.random.randint(k_b, (OC,), -1000, 1000, dtype=jnp.int32)
        w_s = jax.random.uniform(k_ws, (OC, 1, 1, 1), jnp.float32, 0.01, 0.05)

        y = quantized_conv2d_pallas(
            x, weight, bias, in_zp, out_zp, in_s, w_s, out_s,
            stride, padding, dilation, groups=1, bitwidth_x=8, bitwidth_w=8)
        y = jax.block_until_ready(y)

        dil = dilation if isinstance(dilation, tuple) else (dilation, dilation)
        y_ref = _reference(x, weight, bias, in_zp, out_zp, in_s, w_s, out_s,
                           stride, padding, dil)
        if y.shape != y_ref.shape or y.dtype != jnp.int8:
            raise AssertionError("bad output shape/dtype: %s %s" % (y.shape, y.dtype))
        if not bool(jnp.all(y == y_ref)):
            raise AssertionError("Pallas kernel mismatch vs reference")

    key = jax.random.PRNGKey(0)
    k1, k2 = jax.random.split(key)

    # Case 1: small OC -> transposed (M-on-lanes) orientation, single K step.
    run_case(k1, N=2, C=4, H=16, W=16, OC=8, KH=3, KW=3,
             stride=(1, 1), padding=(1, 1), dilation=1,
             in_zp=5, out_zp=-3, in_s=0.043, out_s=0.089)

    # Case 2: wider OC -> lane-dense [M, OC] orientation, strided conv.
    run_case(k2, N=1, C=16, H=8, W=8, OC=64, KH=3, KW=3,
             stride=(2, 2), padding=(1, 1), dilation=1,
             in_zp=-7, out_zp=4, in_s=0.031, out_s=0.057)

    print("KERNEL_OK")
</pallas_src>

<mosaic_0001>
module attributes {stable_mosaic.version = 11 : i64} {
  func.func @_qconv_kernel_single(%arg0: i32, %arg1: i32, %arg2: i32, %arg3: memref<8x36xi8, #tpu.memory_space<vmem>>, %arg4: memref<36x256xi8, #tpu.memory_space<vmem>>, %arg5: memref<8x1xf32, #tpu.memory_space<vmem>>, %arg6: memref<8x1xf32, #tpu.memory_space<vmem>>, %arg7: memref<8x256xi8, #tpu.memory_space<vmem>>) attributes {dimension_semantics = [#tpu.dimension_semantics<parallel>, #tpu.dimension_semantics<parallel>, #tpu.dimension_semantics<arbitrary>], iteration_bounds = array<i64: 2, 1, 1>, scalar_prefetch = 0 : i64, scratch_operands = 0 : i64, tpu.core_type = #tpu.core_type<tc>, window_params = [{transform_indices = @transform_0, window_bounds = array<i64: 8, 36>}, {transform_indices = @transform_1, window_bounds = array<i64: 36, 256>}, {pipeline_mode = #tpu.pipeline_mode<synchronous>, transform_indices = @transform_2, window_bounds = array<i64: 8, 1>}, {pipeline_mode = #tpu.pipeline_mode<synchronous>, transform_indices = @transform_3, window_bounds = array<i64: 8, 1>}, {transform_indices = @transform_4, window_bounds = array<i64: 8, 256>}]} {
    %c0 = arith.constant 0 : index
    %c0_0 = arith.constant 0 : index
    %0 = vector.load %arg3[%c0, %c0_0] : memref<8x36xi8, #tpu.memory_space<vmem>>, vector<8x36xi8>
    %c0_1 = arith.constant 0 : index
    %c0_2 = arith.constant 0 : index
    %1 = vector.load %arg4[%c0_1, %c0_2] : memref<36x256xi8, #tpu.memory_space<vmem>>, vector<36x256xi8>
    %2 = arith.sitofp %0 : vector<8x36xi8> to vector<8x36xbf16>
    %3 = arith.sitofp %1 : vector<36x256xi8> to vector<36x256xbf16>
    %cst = arith.constant dense<0.000000e+00> : vector<8x256xf32>
    %4 = tpu.matmul %2, %3, %cst {dimension_numbers = #tpu.dot_dimension_numbers<[1], [0], [0], [1], [0, 0, 1, 1], [], []>} : vector<8x36xbf16>, vector<36x256xbf16>, vector<8x256xf32> -> vector<8x256xf32>
    %c0_3 = arith.constant 0 : index
    %c0_4 = arith.constant 0 : index
    %5 = vector.load %arg5[%c0_3, %c0_4] : memref<8x1xf32, #tpu.memory_space<vmem>>, vector<8x1xf32>
    %6 = vector.broadcast %5 : vector<8x1xf32> to vector<8x256xf32>
    %7 = arith.addf %4, %6 : vector<8x256xf32>
    %c0_5 = arith.constant 0 : index
    %c0_6 = arith.constant 0 : index
    %8 = vector.load %arg6[%c0_5, %c0_6] : memref<8x1xf32, #tpu.memory_space<vmem>>, vector<8x1xf32>
    %9 = vector.broadcast %8 : vector<8x1xf32> to vector<8x256xf32>
    %10 = arith.mulf %7, %9 : vector<8x256xf32>
    %cst_7 = arith.constant -3.000000e+00 : f32
    %11 = vector.broadcast %cst_7 : f32 to vector<8x256xf32>
    %12 = arith.addf %10, %11 : vector<8x256xf32>
    %13 = math.roundeven %12 : vector<8x256xf32>
    %cst_8 = arith.constant -1.280000e+02 : f32
    %cst_9 = arith.constant 1.270000e+02 : f32
    %14 = vector.broadcast %cst_8 : f32 to vector<8x256xf32>
    %15 = arith.maximumf %14, %13 : vector<8x256xf32>
    %16 = vector.broadcast %cst_9 : f32 to vector<8x256xf32>
    %17 = arith.minimumf %16, %15 : vector<8x256xf32>
    %18 = arith.fptosi %17 : vector<8x256xf32> to vector<8x256xi8>
    %c0_10 = arith.constant 0 : index
    %c0_11 = arith.constant 0 : index
    %19 = vector.load %arg7[%c0_10, %c0_11] : memref<8x256xi8, #tpu.memory_space<vmem>>, vector<8x256xi8>
    tpu.vector_store %arg7[%c0_10, %c0_11], %18 {strides = array<i32>} : memref<8x256xi8, #tpu.memory_space<vmem>>, vector<8x256xi8>,
    return
  }
  func.func @transform_0(%arg0: i32, %arg1: i32, %arg2: i32) -> (i32, i32) {
    %c0_i32 = arith.constant 0 : i32
    %c0_i32_0 = arith.constant 0 : i32
    return %c0_i32, %arg2 : i32, i32
  }
  func.func @transform_1(%arg0: i32, %arg1: i32, %arg2: i32) -> (i32, i32) {
    %c0_i32 = arith.constant 0 : i32
    return %arg2, %arg0 : i32, i32
  }
  func.func @transform_2(%arg0: i32, %arg1: i32, %arg2: i32) -> (i32, i32) {
    %c0_i32 = arith.constant 0 : i32
    %c0_i32_0 = arith.constant 0 : i32
    %c0_i32_1 = arith.constant 0 : i32
    return %c0_i32, %c0_i32_0 : i32, i32
  }
  func.func @transform_3(%arg0: i32, %arg1: i32, %arg2: i32) -> (i32, i32) {
    %c0_i32 = arith.constant 0 : i32
    %c0_i32_0 = arith.constant 0 : i32
    %c0_i32_1 = arith.constant 0 : i32
    return %c0_i32, %c0_i32_0 : i32, i32
  }
  func.func @transform_4(%arg0: i32, %arg1: i32, %arg2: i32) -> (i32, i32) {
    %c0_i32 = arith.constant 0 : i32
    %c0_i32_0 = arith.constant 0 : i32
    return %c0_i32, %arg0 : i32, i32
  }
}

</mosaic_0001>

<bundles_post_ra>
// kernel: tpu_custom_call.1
= control target key start
LH: loop header
LB: loop body
LE: loop exit
PB: predicated region body
PF: predicated region fallthrough
CT: control target
= control target key end

     0   :  { %9 = vsyncpa [#allocation3], 0  ;;  %s923_s0 = inlined_call_operand.vmem [shape: s8[8,36], index: 0, kind: input, shape index: {}]   ;;  %s924_s1 = inlined_call_operand.hbm [shape: s8[36,512], index: 1, kind: input, shape index: {}]   ;;  %s925_s2 = inlined_call_operand.vmem [shape: f32[8,1], index: 2, kind: input, shape index: {}]   ;;  %s926_s3 = inlined_call_operand.vmem [shape: f32[8,1], index: 3, kind: input, shape index: {}]   ;;  %s927_s4 = inlined_call_operand.hbm [shape: s8[8,512], index: 4, kind: output, shape index: {}]  }
   0x1   :  { %11 = vsyncpa [#allocation3 + $0x1], 0 }
   0x2   :  { %12 = vsyncpa [#allocation4], 0 }
   0x3   :  { %14 = vsyncpa [#allocation4 + $0x1], 0  ;;  %s742_s15 = smov 0   ;;  %s744_s16 = smov 0  }
   0x4   :  { %s746_s17 = smov 0   ;;  %s748_s18 = smov 0  }
   0x5   :  { %s750_s19 = smov 0   ;;  %s752_s20 = smov 0  }
   0x6 LB: > { %s502_s21 = sadd.s32 4294967295, %s709_s20   ;;  %s503_s22 = sadd.s32 4294967294, %s709_s20   ;;  %s709_s20 = sphi %s752_s20, %s20_s20   ;;  %s705_s19 = sphi %s750_s19, %s941_s19   ;;  %s701_s18 = sphi %s748_s18, %s940_s18   ;;  %s697_s17 = sphi %s746_s17, %s939_s17   ;;  %s693_s16 = sphi %s744_s16, %s938_s16   ;;  %s689_s15 = sphi %s742_s15, %s937_s15  }
   0x7   : > { %s39_s23 = sadd.s32 1, %s705_s19  ;;  %s74_s24 = sadd.s32 1, %s697_s17 }
   0x8   : > { %p41_p0 = scmp.ge.s32.totalorder %s39_s23, 2  ;;  %p81_p1 = scmp.ne.s32.totalorder %s697_s17, %s693_s16 }
   0x9   : > { %p82_p2 = scmp.eq.s32.totalorder %s709_s20, 0  ;;  %p87_p3 = scmp.ne.s32.totalorder %s693_s16, %s689_s15 }
   0xa   : > { %s943_s23 = smov (%p41_p0, %s39_s23), 0  ;;  %p88_p5 = scmp.eq.s32.totalorder %s502_s21, 0 }
   0xb   : > { %p783_p4 = por %p82_p2, %p81_p1  ;;  %s70_s26 = ssub.s32 %s705_s19, %s943_s23 }
   0xc   : > { %p153_p6 = scmp.eq.s32.totalorder %s502_s21, 1  ;;  %p72_p7 = scmp.eq.s32.totalorder %s70_s26, 0 }
   0xd   : > { %p789_p8 = por %p88_p5, %p87_p3  ;;  %p159_p10 = scmp.eq.s32.totalorder %s503_s22, 1 }
   0xe   : > { %p793_p9 = por %p153_p6, %p81_p1  ;;  %p542_p13 = scmp.lt.s32.totalorder %s709_s20, 2 }
   0xf   : > { %s798_s29 = scalar_select %p72_p7, %s697_s17, %s74_s24  }
  0x10   : > { %s931_s28 = scalar_select %p793_p9, 1, 0 }
  0x11   : > { %p800_p11 = por %p159_p10, %p87_p3  ;;  %s192_s5 = sand.u32 1, %s697_s17  }
  0x12   : > { %s526_s6 = smul.u32 20, %s192_s5  ;;  %s524_s7 = sshll.u32 %s705_s19, 6 }
  0x13   : > { %s932_s30 = scalar_select %p800_p11, 1, 0 }
  0x14   : > { %p810_p0 = pnand %p542_p13, %p783_p4  ;;  %s817_s11 = scalar_lea.hbm %s924_s1, %s524_s7 }
  0x15   : > { %s196_s12 = scalar_lea.vmem [#allocation2], %s526_s6  ;;  %s821_s14 = scalar_lea.sflag [#allocation3], %s192_s5 }
  0x16   : > { %s206_s13 = sshll.u32 %s196_s12, 4  ;;  %s597_s21 = scalar_lea.hbm %s817_s11, 320  ;;  %s819_s13 = int_to_ptr.vmem [resolvable:$true] %s206_s13 }
  0x17   : > { %p598_p1 = scmp.ne.s32.totalorder %s817_s11, %s597_s21  ;;  %p599_p2 = pneg %p810_p0 }
  0x18   : > { %s602_s25 = scalar_lea.hbm %s924_s1, 640  ;;  %p603_p5 = scmp.lt.u32.totalorder %s817_s11, %s924_s1 }
  0x19   : > { %p600_p3 = pnand %p599_p2, %p598_p1  ;;  %p604_p6 = scmp.lt.u32.totalorder %s602_s25, %s597_s21 }
  0x1a   : > { %p606_p10 = scmp.lt.u32.totalorder %s597_s21, %s817_s11 }
  0x1b   : > { %p601_p4 = pneg %p600_p3  ;;  %p605_p7 = por %p604_p6, %p603_p5 }
  0x1d   : > { %p607_p13 = por %p606_p10, %p605_p7 }
  0x1f   : > { %p608_p12 = pnand %p607_p13, %p601_p4 }
  0x21   : > { %611 = shalt.err (!%p608_p12)
}
  0x22   : > { %s612_s5 = scalar_lea.vmem %s819_s13, 320  ;;  %s711_s6 = smov [#allocation2]  }
  0x23   : > { %p613_p1 = scmp.ne.s32.totalorder %s819_s13, %s612_s5  ;;  %s617_s9 = sshll.u32 %s711_s6, 4  ;;  %s618_s9 = int_to_ptr.vmem [resolvable:$false] %s617_s9 }
  0x24   : > { %s619_s10 = scalar_lea.vmem %s618_s9, 640  ;;  %p620_p9 = scmp.lt.s32.totalorder %s819_s13, %s618_s9 }
  0x25   : > { %p615_p3 = pnand %p613_p1, %p599_p2  ;;  %p621_p5 = scmp.lt.s32.totalorder %s619_s10, %s612_s5 }
  0x27   : > { %p616_p11 = pneg %p615_p3  ;;  %p622_p6 = por %p621_p5, %p620_p9 }
  0x29   : > { %p623_p7 = pnand %p622_p6, %p616_p11 }
  0x2b   : > { %626 = shalt.err (!%p623_p7)
}
  0x2c   : > { %s712_s12 = smov 128   ;;  %s713_s21 = smov 64  }
  0x2d   : > { %s714_s22 = smov 4   ;;  %p509_p12 = scmp.ge.s32.totalorder %s709_s20, 1 }
  0x2e   : > { %537 = dma.hbm_to_vmem [thread:$0]  (!%p810_p0), %s817_s11, 320, %s819_s13, %s821_s14, %s712_s12, %s713_s21, %s714_s22  }
  0x2f   : > { %p214_p2 = scmp.lt.s32.totalorder %s709_s20, 3 }
  0x31   : > { %p215_p4 = pnand %p509_p12, %p214_p2 }
  0x32   : > { %s852_s24 = sand.u32 (!%p215_p4), 1, %s693_s16  }
  0x33   : > { %218 = sbr.rel (%p215_p4) target bundleno = 327 (0x147), region = 36  ;;  %s221_s26 = scalar_lea.sflag (!%p215_p4), [#allocation3], %s852_s24 }
  0x34   : > { %s527_s25 = smul.u32 (!%p215_p4), 20, %s852_s24 }
  0x36   : > { %s224_s7 = scalar_lea.vmem (!%p215_p4), [#allocation2], %s527_s25 }
  0x3a   : > { %680 = dma.done.wait (%p789_p8), %s221_s26, 320  }
  0x3b   : > { %682 = vsyncadd (%p789_p8), %s221_s26, 4294966976  ;;  %v715_v0 = vmov 0   ;;  %v262_v1 = vld [vmem:[%s224_s7] sm:$0xff]   ;;  %v264_v2 = vld [vmem:[%s224_s7 + $0x8] sm:$0xff]   ;;  %vm308_vm0 = vcmask 1041408   ;;  %vm304_vm1 = vcmask 293888  }
  0x3c   : > { %347 = vmatprep.mubr.bf16.mxu0 %v715_v0  ;;  %596 = vset.pattern.permute.xlu0 %v715_v0  ;;  %v266_v3 = vld [vmem:[%s224_s7 + $0x10] sm:$0x5]  ;;  %v268_v4 = vunpack.c.l.s8.bf16 %v262_v1  ;;  %v269_v5 = vunpack.c.h.s8.bf16 %v262_v1  ;;  %v270_v6 = vunpack.c.l.s8.bf16 %v264_v2  ;;  %v271_v7 = vunpack.c.h.s8.bf16 %v264_v2  ;;  %v261_v17 = vld [vmem:[%s923_s0] sm:$0x3]  ;;  %s510_s6 = sshll.u32 %s852_s24, 2  ;;  %s525_s9 = sshll.u32 %s701_s18, 6 }
  0x3d   : > { %v273_v8 = vld [vmem:[%s925_s2] sm:$0xff]  ;;  %v272_v12 = vunpack.c.l.s8.bf16 %v266_v3  ;;  %v267_v19 = vunpack.c.l.s8.bf16 %v261_v17  ;;  %s252_s10 = scalar_lea.vmem [#allocation5], %s510_s6  ;;  %s874_s25 = scalar_lea.hbm %s927_s4, %s525_s9 }
  0x3e   : > { %276 = vperm.xlu0 %596, %v273_v8   ;;  %v512_v9 = vcombine.high %v268_v4, %v269_v5  ;;  %v511_v10 = vcombine.low %v268_v4, %v269_v5  ;;  %v514_v11 = vcombine.high %v270_v6, %v271_v7  ;;  %v356_v13 = vld [vmem:[%s926_s3] sm:$0xff]  ;;  %v513_v14 = vcombine.low %v270_v6, %v271_v7  ;;  %s406_s12 = sshll.u32 %s252_s10, 4  ;;  %s392_s26 = scalar_lea.sflag [#allocation4], %s852_s24  ;;  %s876_s12 = int_to_ptr.vmem [resolvable:$true] %s406_s12 }
  0x3f   : > { %v516_v15 = vcombine.high %v272_v12, %v272_v12  ;;  %v515_v16 = vcombine.low %v272_v12, %v272_v12  ;;  %s627_s7 = scalar_lea.vmem %s876_s12, 64  ;;  %p934_p9 = scmp.ne.s32.totalorder %s931_s28, 0 }
  0x40   : > { %315 = vmatprep.subr.bf16.mxu0 %v512_v9  ;;  %p628_p8 = scmp.ne.s32.totalorder %s876_s12, %s627_s7  ;;  %s716_s18 = smov [#allocation5]  }
  0x41   : > { %316 = vmatpush1.bf16.msra.mxu0 %v511_v10  ;;  %v310_v18 = vsel %vm308_vm0, %v515_v16, 0  ;;  %s631_s8 = sshll.u32 %s716_s18, 4  ;;  %s632_s8 = int_to_ptr.vmem [resolvable:$false] %s631_s8 }
  0x42   : > { %359 = vperm.xlu0 %596, %v356_v13   ;;  %317 = vmatprep.subr.bf16.mxu0 %v514_v11  ;;  %p629_p11 = pnand %p628_p8, %p934_p9  ;;  %s633_s11 = scalar_lea.vmem %s632_s8, 128 }
  0x43   : > { %p634_p10 = scmp.lt.s32.totalorder %s876_s12, %s632_s8  ;;  %p635_p13 = scmp.lt.s32.totalorder %s633_s11, %s627_s7 }
  0x44   : > { %p630_p0 = pneg %p629_p11 }
  0x45   : > { %318 = vmatpush1.bf16.msra.mxu0 %v513_v14  ;;  %p636_p1 = por %p635_p13, %p634_p10 }
  0x46   : > { %517 = vmatprep.subr.msk.bf16.mxu0 %vm308_vm0, %v516_v15 }
  0x47   : > { %p637_p3 = pnand %p636_p1, %p630_p0 }
  0x49   : > { %320 = vmatpush1.bf16.msra.mxu0 %v310_v18 }
  0x4c   : > { %518 = vmatmul.mubr.msk.bf16.vlgmr.msra.gmra.mrb[0].mxu0 %vm304_vm1, %v267_v19 }
  0xbd   : > { %v277_v20 = vpop.permute.xlu0 %276 }
  0xc1   : > { %v360_v24 = vpop.permute.xlu0 %359 }
 0x11f   : > { %v349_v21 = vpop.f32.mrb[0].mxu0 }
 0x120   : > { %v350_v22 = vadd.f32 %v349_v21, %v277_v20  ;;  %v351_v23 = vpop.f32.mrb[1].mxu0 }
 0x121   : > { %v352_v25 = vadd.f32 %v351_v23, %v277_v20  ;;  %v353_v26 = vpop.f32.mrb[2].mxu0 }
 0x122   : > { %v362_v27 = vmul.f32 %v360_v24, %v350_v22  ;;  %v354_v28 = vpop.f32.mrb[3].mxu0 }
 0x123   : > { %v363_v29 = vmul.f32 %v360_v24, %v352_v25 }
 0x124   : > { %v364_v30 = vadd.f32 -3.0, %v362_v27 }
 0x125   : > { %v365_v31 = vadd.f32 -3.0, %v363_v29 }
 0x126   : > { %v528_v32 = vround.rtne.f32 %v364_v30 }
 0x127   : > { %v529_v33 = vround.rtne.f32 %v365_v31 }
 0x128   : > { %v368_v34 = vmax.f32 %v528_v32, -128.0 }
 0x129   : > { %v369_v35 = vmax.f32 %v529_v33, -128.0 }
 0x12a   : > { %v370_v36 = vmin.f32 %v368_v34, 127.0 }
 0x12b   : > { %v371_v37 = vmin.f32 %v369_v35, 127.0 }
 0x12c   : > { %v372_v38 = vtrunc.f32 %v370_v36 }
 0x12d   : > { %v373_v39 = vtrunc.f32 %v371_v37 }
 0x12e   : > { %v374_v40 = vpack.c.f32.eXmY %v372_v38, %v372_v38, 312 }
 0x12f   : > { %v380_v41 = vpack.c.f32.eXmY %v373_v39, %v373_v39, 312 }
 0x130   : > { %v378_v42 = vpack.c.b8 %v374_v40, %v374_v40 }
 0x131   : > { %v384_v43 = vpack.c.b8 %v380_v41, %v380_v41 }
 0x132   : > { %v386_v44 = vunpack.c.0.s8 %v378_v42 }
 0x133   : > { %v387_v45 = vunpack.c.0.s8 %v384_v43 }
 0x135   : > { %v388_v46 = vpack.c.b16 %v387_v45, %v386_v44 }
 0x137   : > { %v389_v47 = vpack.c.b8 %v388_v46, %v388_v46 }
 0x139   : > { %390 = vst [vmem:[%s252_s10] sm:$0xf] %v389_v47 }
 0x13a   : > { %640 = shalt.err (!%p637_p3)
}
 0x13b   : > { %s641_s24 = scalar_lea.hbm %s874_s25, 64  ;;  %s645_s14 = scalar_lea.hbm %s927_s4, 128 }
 0x13c   : > { %p642_p5 = scmp.ne.s32.totalorder %s874_s25, %s641_s24  ;;  %p646_p12 = scmp.lt.u32.totalorder %s874_s25, %s927_s4 }
 0x13d   : > { %p647_p2 = scmp.lt.u32.totalorder %s645_s14, %s641_s24  ;;  %p649_p8 = scmp.lt.u32.totalorder %s641_s24, %s874_s25 }
 0x13e   : > { %p643_p6 = pnand %p642_p5, %p934_p9 }
 0x13f   : > { %p648_p4 = por %p647_p2, %p646_p12 }
 0x140   : > { %p644_p7 = pneg %p643_p6 }
 0x141   : > { %p650_p11 = por %p649_p8, %p648_p4 }
 0x143   : > { %p651_p0 = pnand %p650_p11, %p644_p7 }
 0x145   : > { %654 = shalt.err (!%p651_p0)
}
 0x146   : > { %532 = dma.vmem_to_hbm [thread:$0]  (%p934_p9), %s876_s12, 64, %s874_s25, %s392_s26  }
 0x147 PF: > { %s418_s9 = sand.u32 1, %s689_s15   ;;  %p935_p10 = scmp.ne.s32.totalorder %s932_s30, 0 }
 0x148   : > { %p936_p13 = scmp.ge.s32.totalorder %s709_s20, 2  ;;  %s419_s10 = scalar_lea.sflag [#allocation4], %s418_s9 }
 0x14a   : > { %p539_p1 = pnand %p936_p13, %p935_p10 }
 0x14c   : > { %684 = dma.done.wait (!%p539_p1), %s419_s10, 64  }
 0x14d   : > { %686 = vsyncadd (!%p539_p1), %s419_s10, 4294967232  ;;  %s20_s20 = sadd.s32 1, %s709_s20   ;;  %s937_s15 = smov %s693_s16 }
 0x14e   : > { %p17_p3 = scmp.ge.s32.totalorder %s20_s20, 4   ;;  %s938_s16 = smov %s697_s17 }
 0x14f   : > { %s939_s17 = smov %s798_s29  ;;  %s940_s18 = smov %s705_s19 }
 0x150   : > { %s941_s19 = smov %s943_s23  ;;  %19 = sbr.rel (!%p17_p3) target bundleno = 6 (0x6), region = 84 }
 0x157   :  { %424 = vsyncpa [#allocation3], 1 }
 0x158   :  { %426 = vsyncpa [#allocation3 + $0x1], 1 }
 0x159   :  { %427 = vsyncpa [#allocation4], 1 }
 0x15a   :  { %429 = vsyncpa [#allocation4 + $0x1], 1 }

</bundles_post_ra>
